<compile_context>
chip_gen: v7x
topology: tpu7x:2x2x1
jax: 0.10.0
libtpu: 0.0.40
codegen_flags: <defaults>
</compile_context>

<pallas_src>
import math

import jax
import jax.numpy as jnp
import numpy as np
from jax.experimental import pallas as pl
from jax.experimental.pallas import tpu as pltpu


def make_self_attention_kernel(n_embd: int, n_head: int, head_dim: int,
                               q_tile: int, kv_tile: int):
    C, H, hd, TQ, TK = n_embd, n_head, head_dim, q_tile, kv_tile
    f32, bf16 = jnp.float32, jnp.bfloat16

    def kernel(xq_ref, wq_ref, bq_ref, k_ref, v_ref, bias_ref, wp_ref, bp_ref,
               o_ref, q_sc, m_sc, l_sc, acc_sc):
        ki = pl.program_id(2)

        @pl.when(ki == 0)
        def _init():
            # Q projection once per (q-tile, batch); 1/sqrt(hd) is already
            # folded into wq/bq.  Stored head-split (TQ, H, hd) in scratch.
            q = jnp.dot(xq_ref[...], wq_ref[...],
                        preferred_element_type=f32) + bq_ref[...]
            q_sc[...] = q.reshape(TQ, H, hd).astype(bf16)
            m_sc[...] = jnp.full(m_sc.shape, -jnp.inf, f32)
            l_sc[...] = jnp.zeros(l_sc.shape, f32)
            acc_sc[...] = jnp.zeros(acc_sc.shape, f32)

        # Head-batched scores for this kv tile: (H, TQ, TK), f32 accumulate.
        # TODO(synk): verify with pl.lower_as_mlir that these einsums lower to
        # one batched vmatmul stream, not an unrolled per-head loop.
        s = jnp.einsum("qhd,hkd->hqk", q_sc[...], k_ref[...],
                       preferred_element_type=f32)
        s = s + bias_ref[...].astype(f32)

        # Online softmax update (statistics in f32).
        m_prev = m_sc[...]
        m_new = jnp.maximum(m_prev, jnp.max(s, axis=-1, keepdims=True))
        alpha = jnp.exp(m_prev - m_new)
        p = jnp.exp(s - m_new)
        l_sc[...] = alpha * l_sc[...] + jnp.sum(p, axis=-1, keepdims=True)
        acc_sc[...] = alpha * acc_sc[...] + jnp.einsum(
            "hqk,hkd->hqd", p.astype(bf16), v_ref[...],
            preferred_element_type=f32)
        m_sc[...] = m_new

        @pl.when(ki == pl.num_programs(2) - 1)
        def _finalize():
            inv_l = pl.reciprocal(l_sc[...], approx=True)        # EUP divide
            y = acc_sc[...] * inv_l                              # (H, TQ, hd)
            # single head-merge relayout per q-tile (amortized over kv tiles)
            y = y.transpose(1, 0, 2).reshape(TQ, C).astype(bf16)
            out = jnp.dot(y, wp_ref[...],
                          preferred_element_type=f32) + bp_ref[...]
            o_ref[...] = out.astype(o_ref.dtype)

    return kernel


def _vmem_budget_bytes():
    """~80% of physical VMEM (~51 MiB on v7x, ~102 MiB on v5e/v6e)."""
    try:
        return int(pltpu.get_tpu_info().vmem_capacity_bytes * 0.8)
    except Exception:
        return None  # fall back to the compiler's scoped default


def _pick_tile(T: int, vmem_budget) -> int:
    if T <= 256:
        return T                         # short sequence: one tile, no padding
    # 128-MiB parts (v5e/v6e) can afford bigger tiles; keep 256 on v7x.
    if vmem_budget is not None and vmem_budget > (96 << 20) and T % 512 == 0:
        return 512
    return 256


def self_attention_pallas(x, params, bias_buf, n_head):
    B, T, C = x.shape
    H = n_head
    assert C % H == 0
    hd = C // H
    bias_dim = bias_buf.shape[-1]
    f32, bf16 = jnp.float32, jnp.bfloat16

    vmem_budget = _vmem_budget_bytes()
    tile = _pick_tile(T, vmem_budget)
    Tp = ((T + tile - 1) // tile) * tile          # pad T to a tile multiple
    pad = Tp - T
    tq = tk = tile
    nq, nkv = Tp // tq, Tp // tk

    # ---- parameters: (in, out) layout, bf16 MXU operands, f32 biases -------
    w_attn = params["w_attn"].astype(f32)          # (C, 3C)
    b_attn = params["b_attn"].astype(f32)          # (1, 3C)
    scale = 1.0 / math.sqrt(hd)
    w_q = (w_attn[:, :C] * scale).astype(bf16)     # scale folded into Q proj
    b_q = b_attn[:, :C] * scale                    # (1, C) f32
    w_k, b_k = w_attn[:, C:2 * C], b_attn[:, C:2 * C]
    w_v, b_v = w_attn[:, 2 * C:], b_attn[:, 2 * C:]
    w_proj = params["w_proj"].astype(bf16)         # (C, C)
    b_proj = params["b_proj"].astype(f32)          # (1, C)

    # ---- pad the sequence; padded keys are masked via the bias below -------
    if pad:
        x = jnp.pad(x, ((0, 0), (0, pad), (0, 0)))
    xf = x.astype(f32)

    # ---- hoisted K/V projection: once per batch, head-major bf16 -----------
    k = xf @ w_k + b_k[0]                          # (B, Tp, C) f32
    v = xf @ w_v + b_v[0]
    k_heads = k.reshape(B, Tp, H, hd).transpose(0, 2, 1, 3).astype(bf16)
    v_heads = v.reshape(B, Tp, H, hd).transpose(0, 2, 1, 3).astype(bf16)

    # ---- hoisted batch-invariant bias projection, stored bf16 --------------
    bproj = (bias_buf.reshape(T * T, bias_dim).astype(f32)
             @ params["w_bp"].astype(f32) + params["b_bp"].astype(f32)[0])
    bproj = bproj.reshape(T, T, H).transpose(2, 0, 1)       # (H, T, T)
    if pad:
        # mask padded KEY columns; padded query rows are sliced off at return.
        bproj = jnp.pad(bproj, ((0, 0), (0, 0), (0, pad)),
                        constant_values=-1e30)
        bproj = jnp.pad(bproj, ((0, 0), (0, pad), (0, 0)))
    bproj = bproj.astype(bf16)

    x_bf = x.astype(bf16)

    kernel = make_self_attention_kernel(C, H, hd, tq, tk)

    def _invariant(shape):
        """Grid-invariant block; single-buffered if this JAX supports it."""
        imap = lambda qi, b, ki: (0,) * len(shape)
        try:
            return pl.BlockSpec(shape, imap, pipeline_mode=pl.Buffered(1))
        except Exception:
            return pl.BlockSpec(shape, imap)

    grid_spec = pltpu.PrefetchScalarGridSpec(
        num_scalar_prefetch=0,
        # kv (reduction) axis innermost; when nkv == 1 the bias block index is
        # constant along the inner batch axis so its DMA is skipped across B.
        grid=(nq, B, nkv),
        in_specs=[
            pl.BlockSpec((None, tq, C), lambda qi, b, ki: (b, qi, 0)),       # x q rows
            _invariant((C, C)),                                              # w_q
            _invariant((1, C)),                                              # b_q
            pl.BlockSpec((None, H, tk, hd), lambda qi, b, ki: (b, 0, ki, 0)),  # K
            pl.BlockSpec((None, H, tk, hd), lambda qi, b, ki: (b, 0, ki, 0)),  # V
            pl.BlockSpec((H, tq, tk), lambda qi, b, ki: (0, qi, ki)),        # bias
            _invariant((C, C)),                                              # w_proj
            _invariant((1, C)),                                              # b_proj
        ],
        out_specs=pl.BlockSpec((None, tq, C), lambda qi, b, ki: (b, qi, 0)),
        scratch_shapes=[
            pltpu.VMEM((tq, H, hd), bf16),   # Q tile (head-split)
            pltpu.VMEM((H, tq, 1), f32),     # running max
            pltpu.VMEM((H, tq, 1), f32),     # running denominator
            pltpu.VMEM((H, tq, hd), f32),    # output accumulator
        ],
    )

    out = pl.pallas_call(
        kernel,
        # Kept f32 for parity with the reference; flip to bf16 if downstream
        # accepts it (halves writeback bytes + output VMEM).
        out_shape=jax.ShapeDtypeStruct((B, Tp, C), jnp.float32),
        grid_spec=grid_spec,
        compiler_params=pltpu.CompilerParams(
            dimension_semantics=("parallel", "parallel", "arbitrary"),
            vmem_limit_bytes=vmem_budget,
        ),
    )(x_bf, w_q, b_q, k_heads, v_heads, bproj, w_proj, b_proj)

    return out[:, :T, :] if pad else out


def self_attention_reference(x, params, bias_buf, n_head):
    """Pure-JAX f32 reference mirroring the PyTorch forward exactly."""
    B, T, C = x.shape
    hd = C // n_head
    qkv = x @ params["w_attn"] + params["b_attn"][0]
    q, k, v = jnp.split(qkv, 3, axis=2)
    q = q.reshape(B, T, n_head, hd).transpose(0, 2, 1, 3)
    k = k.reshape(B, T, n_head, hd).transpose(0, 2, 1, 3)
    v = v.reshape(B, T, n_head, hd).transpose(0, 2, 1, 3)
    att = (q @ k.transpose(0, 1, 3, 2)) * (1.0 / math.sqrt(hd))
    bproj = bias_buf @ params["w_bp"] + params["b_bp"][0]        # (T, T, nh)
    att = att + bproj.transpose(2, 0, 1)[None]                   # (1, nh, T, T)
    att = jax.nn.softmax(att, axis=-1)
    y = att @ v
    y = y.transpose(0, 2, 1, 3).reshape(B, T, C)
    return y @ params["w_proj"] + params["b_proj"][0]


if __name__ == "__main__":
    B, T, C = 2, 8, 32
    n_head = 4
    bias_dim = 6

    key = jax.random.PRNGKey(0)
    ks = jax.random.split(key, 8)

    x = jax.random.normal(ks[0], (B, T, C), dtype=jnp.float32)
    bias_buf = jax.random.normal(ks[1], (T, T, bias_dim), dtype=jnp.float32)

    # Deterministic parameter init (nn.Linear shapes, stored as (in, out)).
    params = {
        "w_attn": 0.05 * jax.random.normal(ks[2], (C, 3 * C), dtype=jnp.float32),
        "b_attn": 0.01 * jax.random.normal(ks[3], (1, 3 * C), dtype=jnp.float32),
        "w_proj": 0.05 * jax.random.normal(ks[4], (C, C), dtype=jnp.float32),
        "b_proj": 0.01 * jax.random.normal(ks[5], (1, C), dtype=jnp.float32),
        "w_bp": 0.1 * jax.random.normal(ks[6], (bias_dim, n_head), dtype=jnp.float32),
        "b_bp": 0.01 * jax.random.normal(ks[7], (1, n_head), dtype=jnp.float32),
    }

    out = jax.block_until_ready(self_attention_pallas(x, params, bias_buf, n_head))
    ref = jax.block_until_ready(self_attention_reference(x, params, bias_buf, n_head))

    # bf16 MXU operands + approx reciprocal -> loosened tolerance vs pure f32.
    np.testing.assert_allclose(np.asarray(out), np.asarray(ref),
                               rtol=3e-2, atol=3e-2)
    print("KERNEL_OK")
</pallas_src>

<mosaic_0001>
module attributes {stable_mosaic.version = 11 : i64} {
  func.func @kernel(%arg0: i32, %arg1: i32, %arg2: i32, %arg3: memref<1x8x32xbf16, #tpu.memory_space<vmem>>, %arg4: memref<32x32xbf16, #tpu.memory_space<vmem>>, %arg5: memref<1x32xf32, #tpu.memory_space<vmem>>, %arg6: memref<1x4x8x8xbf16, #tpu.memory_space<vmem>>, %arg7: memref<1x4x8x8xbf16, #tpu.memory_space<vmem>>, %arg8: memref<4x8x8xbf16, #tpu.memory_space<vmem>>, %arg9: memref<32x32xbf16, #tpu.memory_space<vmem>>, %arg10: memref<1x32xf32, #tpu.memory_space<vmem>>, %arg11: memref<1x8x32xf32, #tpu.memory_space<vmem>>, %arg12: memref<8x4x8xbf16, #tpu.memory_space<vmem>>, %arg13: memref<4x8x1xf32, #tpu.memory_space<vmem>>, %arg14: memref<4x8x1xf32, #tpu.memory_space<vmem>>, %arg15: memref<4x8x8xf32, #tpu.memory_space<vmem>>) attributes {dimension_semantics = [#tpu.dimension_semantics<parallel>, #tpu.dimension_semantics<parallel>, #tpu.dimension_semantics<arbitrary>], iteration_bounds = array<i64: 1, 2, 1>, scalar_prefetch = 0 : i64, scratch_operands = 4 : i64, tpu.core_type = #tpu.core_type<tc>, window_params = [{transform_indices = @transform_0, window_bounds = array<i64: 1, 8, 32>}, {pipeline_mode = #tpu.pipeline_mode<synchronous>, transform_indices = @transform_1, window_bounds = array<i64: 32, 32>}, {pipeline_mode = #tpu.pipeline_mode<synchronous>, transform_indices = @transform_2, window_bounds = array<i64: 1, 32>}, {transform_indices = @transform_3, window_bounds = array<i64: 1, 4, 8, 8>}, {transform_indices = @transform_4, window_bounds = array<i64: 1, 4, 8, 8>}, {transform_indices = @transform_5, window_bounds = array<i64: 4, 8, 8>}, {pipeline_mode = #tpu.pipeline_mode<synchronous>, transform_indices = @transform_6, window_bounds = array<i64: 32, 32>}, {pipeline_mode = #tpu.pipeline_mode<synchronous>, transform_indices = @transform_7, window_bounds = array<i64: 1, 32>}, {transform_indices = @transform_8, window_bounds = array<i64: 1, 8, 32>}]} {
    %c0_i32 = arith.constant 0 : i32
    %0 = arith.cmpi eq, %arg2, %c0_i32 : i32
    %1 = arith.extui %0 : i1 to i32
    %c0_i32_0 = arith.constant 0 : i32
    %2 = arith.cmpi ne, %1, %c0_i32_0 : i32
    scf.if %2 {
      %c0_37 = arith.constant 0 : index
      %c0_38 = arith.constant 0 : index
      %c0_39 = arith.constant 0 : index
      %38 = vector.load %arg3[%c0_37, %c0_38, %c0_39] : memref<1x8x32xbf16, #tpu.memory_space<vmem>>, vector<1x8x32xbf16>
      %39 = vector.shape_cast %38 : vector<1x8x32xbf16> to vector<8x32xbf16>
      %c0_40 = arith.constant 0 : index
      %c0_41 = arith.constant 0 : index
      %40 = vector.load %arg4[%c0_40, %c0_41] : memref<32x32xbf16, #tpu.memory_space<vmem>>, vector<32x32xbf16>
      %cst_42 = arith.constant dense<0.000000e+00> : vector<8x32xf32>
      %41 = tpu.matmul %39, %40, %cst_42 {dimension_numbers = #tpu.dot_dimension_numbers<[1], [0], [0], [1], [0, 0, 1, 1], [], []>} : vector<8x32xbf16>, vector<32x32xbf16>, vector<8x32xf32> -> vector<8x32xf32>
      %c0_43 = arith.constant 0 : index
      %c0_44 = arith.constant 0 : index
      %42 = vector.load %arg5[%c0_43, %c0_44] : memref<1x32xf32, #tpu.memory_space<vmem>>, vector<1x32xf32>
      %43 = vector.broadcast %42 : vector<1x32xf32> to vector<8x32xf32>
      %44 = arith.addf %41, %43 : vector<8x32xf32>
      %45 = vector.shape_cast %44 : vector<8x32xf32> to vector<8x4x8xf32>
      %46 = arith.truncf %45 : vector<8x4x8xf32> to vector<8x4x8xbf16>
      %c0_45 = arith.constant 0 : index
      %c0_46 = arith.constant 0 : index
      %c0_47 = arith.constant 0 : index
      %47 = vector.load %arg12[%c0_45, %c0_46, %c0_47] : memref<8x4x8xbf16, #tpu.memory_space<vmem>>, vector<8x4x8xbf16>
      tpu.vector_store %arg12[%c0_45, %c0_46, %c0_47], %46 {strides = array<i32>} : memref<8x4x8xbf16, #tpu.memory_space<vmem>>, vector<8x4x8xbf16>,
      %cst_48 = arith.constant 0xFF800000 : f32
      %48 = vector.broadcast %cst_48 : f32 to vector<4x8x1xf32>
      %c0_49 = arith.constant 0 : index
      %c0_50 = arith.constant 0 : index
      %c0_51 = arith.constant 0 : index
      %49 = vector.load %arg13[%c0_49, %c0_50, %c0_51] : memref<4x8x1xf32, #tpu.memory_space<vmem>>, vector<4x8x1xf32>
      tpu.vector_store %arg13[%c0_49, %c0_50, %c0_51], %48 {strides = array<i32>} : memref<4x8x1xf32, #tpu.memory_space<vmem>>, vector<4x8x1xf32>,
      %cst_52 = arith.constant 0.000000e+00 : f32
      %50 = vector.broadcast %cst_52 : f32 to vector<4x8x1xf32>
      %c0_53 = arith.constant 0 : index
      %c0_54 = arith.constant 0 : index
      %c0_55 = arith.constant 0 : index
      %51 = vector.load %arg14[%c0_53, %c0_54, %c0_55] : memref<4x8x1xf32, #tpu.memory_space<vmem>>, vector<4x8x1xf32>
      tpu.vector_store %arg14[%c0_53, %c0_54, %c0_55], %50 {strides = array<i32>} : memref<4x8x1xf32, #tpu.memory_space<vmem>>, vector<4x8x1xf32>,
      %cst_56 = arith.constant 0.000000e+00 : f32
      %52 = vector.broadcast %cst_56 : f32 to vector<4x8x8xf32>
      %c0_57 = arith.constant 0 : index
      %c0_58 = arith.constant 0 : index
      %c0_59 = arith.constant 0 : index
      %53 = vector.load %arg15[%c0_57, %c0_58, %c0_59] : memref<4x8x8xf32, #tpu.memory_space<vmem>>, vector<4x8x8xf32>
      tpu.vector_store %arg15[%c0_57, %c0_58, %c0_59], %52 {strides = array<i32>} : memref<4x8x8xf32, #tpu.memory_space<vmem>>, vector<4x8x8xf32>,
    } else {
    }
    %c0 = arith.constant 0 : index
    %c0_1 = arith.constant 0 : index
    %c0_2 = arith.constant 0 : index
    %3 = vector.load %arg12[%c0, %c0_1, %c0_2] : memref<8x4x8xbf16, #tpu.memory_space<vmem>>, vector<8x4x8xbf16>
    %c0_3 = arith.constant 0 : index
    %c0_4 = arith.constant 0 : index
    %c0_5 = arith.constant 0 : index
    %c0_6 = arith.constant 0 : index
    %4 = vector.load %arg6[%c0_3, %c0_4, %c0_5, %c0_6] : memref<1x4x8x8xbf16, #tpu.memory_space<vmem>>, vector<1x4x8x8xbf16>
    %5 = vector.shape_cast %4 : vector<1x4x8x8xbf16> to vector<4x8x8xbf16>
    "tpu.trace_start"() <{level = 10 : i32, message = "qhd,hkd->hqk"}> : () -> ()
    %cst = arith.constant dense<0.000000e+00> : vector<4x8x8xf32>
    %6 = tpu.matmul %3, %5, %cst {dimension_numbers = #tpu.dot_dimension_numbers<[2], [2], [0], [1], [0, 1, 0, 0, 1, 1], [1], [0]>} : vector<8x4x8xbf16>, vector<4x8x8xbf16>, vector<4x8x8xf32> -> vector<4x8x8xf32>
    "tpu.trace_stop"() : () -> ()
    %c0_7 = arith.constant 0 : index
    %c0_8 = arith.constant 0 : index
    %c0_9 = arith.constant 0 : index
    %7 = vector.load %arg8[%c0_7, %c0_8, %c0_9] : memref<4x8x8xbf16, #tpu.memory_space<vmem>>, vector<4x8x8xbf16>
    %8 = arith.extf %7 : vector<4x8x8xbf16> to vector<4x8x8xf32>
    %9 = arith.addf %6, %8 : vector<4x8x8xf32>
    %c0_10 = arith.constant 0 : index
    %c0_11 = arith.constant 0 : index
    %c0_12 = arith.constant 0 : index
    %10 = vector.load %arg13[%c0_10, %c0_11, %c0_12] : memref<4x8x1xf32, #tpu.memory_space<vmem>>, vector<4x8x1xf32>
    %cst_13 = arith.constant dense<0xFF800000> : vector<4x8xf32>
    %11 = vector.multi_reduction <maximumf>, %9, %cst_13 [2] : vector<4x8x8xf32> to vector<4x8xf32>
    %12 = vector.shape_cast %11 : vector<4x8xf32> to vector<4x8x1xf32>
    %13 = arith.maximumf %10, %12 : vector<4x8x1xf32>
    %14 = arith.subf %10, %13 : vector<4x8x1xf32>
    %15 = math.exp %14 : vector<4x8x1xf32>
    %16 = vector.broadcast %13 : vector<4x8x1xf32> to vector<4x8x8xf32>
    %17 = arith.subf %9, %16 : vector<4x8x8xf32>
    %18 = math.exp %17 : vector<4x8x8xf32>
    %c0_14 = arith.constant 0 : index
    %c0_15 = arith.constant 0 : index
    %c0_16 = arith.constant 0 : index
    %19 = vector.load %arg14[%c0_14, %c0_15, %c0_16] : memref<4x8x1xf32, #tpu.memory_space<vmem>>, vector<4x8x1xf32>
    %20 = arith.mulf %15, %19 : vector<4x8x1xf32>
    %cst_17 = arith.constant dense<0.000000e+00> : vector<4x8xf32>
    %21 = vector.multi_reduction <add>, %18, %cst_17 [2] : vector<4x8x8xf32> to vector<4x8xf32>
    %22 = vector.shape_cast %21 : vector<4x8xf32> to vector<4x8x1xf32>
    %23 = arith.addf %20, %22 : vector<4x8x1xf32>
    %c0_18 = arith.constant 0 : index
    %c0_19 = arith.constant 0 : index
    %c0_20 = arith.constant 0 : index
    %24 = vector.load %arg14[%c0_18, %c0_19, %c0_20] : memref<4x8x1xf32, #tpu.memory_space<vmem>>, vector<4x8x1xf32>
    tpu.vector_store %arg14[%c0_18, %c0_19, %c0_20], %23 {strides = array<i32>} : memref<4x8x1xf32, #tpu.memory_space<vmem>>, vector<4x8x1xf32>,
    %c0_21 = arith.constant 0 : index
    %c0_22 = arith.constant 0 : index
    %c0_23 = arith.constant 0 : index
    %25 = vector.load %arg15[%c0_21, %c0_22, %c0_23] : memref<4x8x8xf32, #tpu.memory_space<vmem>>, vector<4x8x8xf32>
    %26 = vector.broadcast %15 : vector<4x8x1xf32> to vector<4x8x8xf32>
    %27 = arith.mulf %26, %25 : vector<4x8x8xf32>
    %28 = arith.truncf %18 : vector<4x8x8xf32> to vector<4x8x8xbf16>
    %c0_24 = arith.constant 0 : index
    %c0_25 = arith.constant 0 : index
    %c0_26 = arith.constant 0 : index
    %c0_27 = arith.constant 0 : index
    %29 = vector.load %arg7[%c0_24, %c0_25, %c0_26, %c0_27] : memref<1x4x8x8xbf16, #tpu.memory_space<vmem>>, vector<1x4x8x8xbf16>
    %30 = vector.shape_cast %29 : vector<1x4x8x8xbf16> to vector<4x8x8xbf16>
    "tpu.trace_start"() <{level = 10 : i32, message = "hqk,hkd->hqd"}> : () -> ()
    %cst_28 = arith.constant dense<0.000000e+00> : vector<4x8x8xf32>
    %31 = tpu.matmul %28, %30, %cst_28 {dimension_numbers = #tpu.dot_dimension_numbers<[2], [1], [1], [2], [0, 0, 0, 1, 1, 2], [0], [0]>} : vector<4x8x8xbf16>, vector<4x8x8xbf16>, vector<4x8x8xf32> -> vector<4x8x8xf32>
    "tpu.trace_stop"() : () -> ()
    %32 = arith.addf %27, %31 : vector<4x8x8xf32>
    %c0_29 = arith.constant 0 : index
    %c0_30 = arith.constant 0 : index
    %c0_31 = arith.constant 0 : index
    %33 = vector.load %arg15[%c0_29, %c0_30, %c0_31] : memref<4x8x8xf32, #tpu.memory_space<vmem>>, vector<4x8x8xf32>
    tpu.vector_store %arg15[%c0_29, %c0_30, %c0_31], %32 {strides = array<i32>} : memref<4x8x8xf32, #tpu.memory_space<vmem>>, vector<4x8x8xf32>,
    %c0_32 = arith.constant 0 : index
    %c0_33 = arith.constant 0 : index
    %c0_34 = arith.constant 0 : index
    %34 = vector.load %arg13[%c0_32, %c0_33, %c0_34] : memref<4x8x1xf32, #tpu.memory_space<vmem>>, vector<4x8x1xf32>
    tpu.vector_store %arg13[%c0_32, %c0_33, %c0_34], %13 {strides = array<i32>} : memref<4x8x1xf32, #tpu.memory_space<vmem>>, vector<4x8x1xf32>,
    %c0_i32_35 = arith.constant 0 : i32
    %35 = arith.cmpi eq, %arg2, %c0_i32_35 : i32
    %36 = arith.extui %35 : i1 to i32
    %c0_i32_36 = arith.constant 0 : i32
    %37 = arith.cmpi ne, %36, %c0_i32_36 : i32
    scf.if %37 {
      %c0_37 = arith.constant 0 : index
      %c0_38 = arith.constant 0 : index
      %c0_39 = arith.constant 0 : index
      %38 = vector.load %arg14[%c0_37, %c0_38, %c0_39] : memref<4x8x1xf32, #tpu.memory_space<vmem>>, vector<4x8x1xf32>
      %39 = tpu.reciprocal %38 {approx = true} : vector<4x8x1xf32> -> vector<4x8x1xf32>
      %c0_40 = arith.constant 0 : index
      %c0_41 = arith.constant 0 : index
      %c0_42 = arith.constant 0 : index
      %40 = vector.load %arg15[%c0_40, %c0_41, %c0_42] : memref<4x8x8xf32, #tpu.memory_space<vmem>>, vector<4x8x8xf32>
      %41 = vector.broadcast %39 : vector<4x8x1xf32> to vector<4x8x8xf32>
      %42 = arith.mulf %40, %41 : vector<4x8x8xf32>
      %43 = tpu.transpose %42, [1, 0, 2] : vector<4x8x8xf32> -> vector<8x4x8xf32>
      %44 = vector.shape_cast %43 : vector<8x4x8xf32> to vector<8x32xf32>
      %45 = arith.truncf %44 : vector<8x32xf32> to vector<8x32xbf16>
      %c0_43 = arith.constant 0 : index
      %c0_44 = arith.constant 0 : index
      %46 = vector.load %arg9[%c0_43, %c0_44] : memref<32x32xbf16, #tpu.memory_space<vmem>>, vector<32x32xbf16>
      %cst_45 = arith.constant dense<0.000000e+00> : vector<8x32xf32>
      %47 = tpu.matmul %45, %46, %cst_45 {dimension_numbers = #tpu.dot_dimension_numbers<[1], [0], [0], [1], [0, 0, 1, 1], [], []>} : vector<8x32xbf16>, vector<32x32xbf16>, vector<8x32xf32> -> vector<8x32xf32>
      %c0_46 = arith.constant 0 : index
      %c0_47 = arith.constant 0 : index
      %48 = vector.load %arg10[%c0_46, %c0_47] : memref<1x32xf32, #tpu.memory_space<vmem>>, vector<1x32xf32>
      %49 = vector.broadcast %48 : vector<1x32xf32> to vector<8x32xf32>
      %50 = arith.addf %47, %49 : vector<8x32xf32>
      %c0_48 = arith.constant 0 : index
      %c0_49 = arith.constant 0 : index
      %c0_50 = arith.constant 0 : index
      %51 = vector.load %arg11[%c0_48, %c0_49, %c0_50] : memref<1x8x32xf32, #tpu.memory_space<vmem>>, vector<1x8x32xf32>
      %52 = vector.shape_cast %51 : vector<1x8x32xf32> to vector<8x32xf32>
      %53 = vector.shape_cast %50 : vector<8x32xf32> to vector<1x8x32xf32>
      tpu.vector_store %arg11[%c0_48, %c0_49, %c0_50], %53 {strides = array<i32>} : memref<1x8x32xf32, #tpu.memory_space<vmem>>, vector<1x8x32xf32>,
    } else {
    }
    return
  }
  func.func @transform_0(%arg0: i32, %arg1: i32, %arg2: i32) -> (i32, i32, i32) {
    %c0_i32 = arith.constant 0 : i32
    %c0_i32_0 = arith.constant 0 : i32
    return %arg1, %arg0, %c0_i32 : i32, i32, i32
  }
  func.func @transform_1(%arg0: i32, %arg1: i32, %arg2: i32) -> (i32, i32) {
    %c0_i32 = arith.constant 0 : i32
    %c0_i32_0 = arith.constant 0 : i32
    %c0_i32_1 = arith.constant 0 : i32
    return %c0_i32, %c0_i32_0 : i32, i32
  }
  func.func @transform_2(%arg0: i32, %arg1: i32, %arg2: i32) -> (i32, i32) {
    %c0_i32 = arith.constant 0 : i32
    %c0_i32_0 = arith.constant 0 : i32
    %c0_i32_1 = arith.constant 0 : i32
    return %c0_i32, %c0_i32_0 : i32, i32
  }
  func.func @transform_3(%arg0: i32, %arg1: i32, %arg2: i32) -> (i32, i32, i32, i32) {
    %c0_i32 = arith.constant 0 : i32
    %c0_i32_0 = arith.constant 0 : i32
    %c0_i32_1 = arith.constant 0 : i32
    return %arg1, %c0_i32, %arg2, %c0_i32_0 : i32, i32, i32, i32
  }
  func.func @transform_4(%arg0: i32, %arg1: i32, %arg2: i32) -> (i32, i32, i32, i32) {
    %c0_i32 = arith.constant 0 : i32
    %c0_i32_0 = arith.constant 0 : i32
    %c0_i32_1 = arith.constant 0 : i32
    return %arg1, %c0_i32, %arg2, %c0_i32_0 : i32, i32, i32, i32
  }
  func.func @transform_5(%arg0: i32, %arg1: i32, %arg2: i32) -> (i32, i32, i32) {
    %c0_i32 = arith.constant 0 : i32
    %c0_i32_0 = arith.constant 0 : i32
    return %c0_i32, %arg0, %arg2 : i32, i32, i32
  }
  func.func @transform_6(%arg0: i32, %arg1: i32, %arg2: i32) -> (i32, i32) {
    %c0_i32 = arith.constant 0 : i32
    %c0_i32_0 = arith.constant 0 : i32
    %c0_i32_1 = arith.constant 0 : i32
    return %c0_i32, %c0_i32_0 : i32, i32
  }
  func.func @transform_7(%arg0: i32, %arg1: i32, %arg2: i32) -> (i32, i32) {
    %c0_i32 = arith.constant 0 : i32
    %c0_i32_0 = arith.constant 0 : i32
    %c0_i32_1 = arith.constant 0 : i32
    return %c0_i32, %c0_i32_0 : i32, i32
  }
  func.func @transform_8(%arg0: i32, %arg1: i32, %arg2: i32) -> (i32, i32, i32) {
    %c0_i32 = arith.constant 0 : i32
    %c0_i32_0 = arith.constant 0 : i32
    return %arg1, %arg0, %c0_i32 : i32, i32, i32
  }
}

</mosaic_0001>

<bundles_post_ra>
// kernel: tpu_custom_call.1
= control target key start
LH: loop header
LB: loop body
LE: loop exit
PB: predicated region body
PF: predicated region fallthrough
CT: control target
= control target key end

     0   :  { %s2884_s0 = inlined_call_operand.hbm [shape: bf16[2,8,32], index: 0, kind: input, shape index: {}]   ;;  %s2885_s1 = inlined_call_operand.hbm [shape: bf16[32,32], index: 1, kind: input, shape index: {}]   ;;  %s2886_s2 = inlined_call_operand.vmem [shape: f32[1,32], index: 2, kind: input, shape index: {}]   ;;  %s2887_s3 = inlined_call_operand.hbm [shape: bf16[2,4,8,8], index: 3, kind: input, shape index: {}]   ;;  %s2888_s4 = inlined_call_operand.hbm [shape: bf16[2,4,8,8], index: 4, kind: input, shape index: {}]   ;;  %s2889_s5 = inlined_call_operand.vmem [shape: bf16[4,8,8], index: 5, kind: input, shape index: {}]   ;;  %s2890_s6 = inlined_call_operand.hbm [shape: bf16[32,32], index: 6, kind: input, shape index: {}]   ;;  %s2891_s7 = inlined_call_operand.vmem [shape: f32[1,32], index: 7, kind: input, shape index: {}]   ;;  %s2892_s8 = inlined_call_operand.hbm [shape: f32[2,8,32], index: 8, kind: output, shape index: {}]  }
   0x1   :  { %2907 = sst [smem:[#allocation26_spill]] %s2884_s0 }
   0x2   :  { %2908 = sst [smem:[#allocation27_spill]] %s2887_s3 }
   0x3   :  { %2909 = sst [smem:[#allocation28_spill]] %s2892_s8 }
   0x4   :  { %13 = vsyncpa [#allocation7], 0 }
   0x5   :  { %15 = vsyncpa [#allocation7 + $0x1], 0 }
   0x6   :  { %16 = vsyncpa [#allocation10], 0 }
   0x7   :  { %17 = vsyncpa [#allocation8], 0 }
   0x8   :  { %19 = vsyncpa [#allocation8 + $0x1], 0  ;;  %s2320_s27 = smov 0   ;;  %s2322_s28 = smov 0  }
   0x9   :  { %s2324_s29 = smov 0   ;;  %s2326_s30 = smov 0  }
   0xa   :  { %s2328_s9 = smov 0   ;;  %s2330_s10 = smov 0  }
   0xb LB: > { %2910 = sst [smem:[#allocation20_spill]] %s2233_s27  ;;  %s40_s11 = sadd.s32 1, %s2249_s9  ;;  %s2253_s10 = sphi %s2330_s10, %s25_s10   ;;  %s2249_s9 = sphi %s2328_s9, %s2947_s9   ;;  %s2245_s30 = sphi %s2326_s30, %s2946_s30   ;;  %s2241_s29 = sphi %s2324_s29, %s2942_s29   ;;  %s2237_s28 = sphi %s2322_s28, %s2945_s28   ;;  %s2233_s27 = sphi %s2320_s27, %s2944_s27  }
   0xc   : > { %2911 = sst [smem:[#allocation21_spill]] %s2241_s29  ;;  %s53_s12 = sadd.s32 1, %s2241_s29 }
   0xd   : > { %2912 = sst [smem:[#allocation22_spill]] %s2253_s10  ;;  %p42_p0 = scmp.ge.s32.totalorder %s40_s11, 2 }
   0xe   : > { %p2893_p1 = scmp.ne.s32.totalorder %s2241_s29, %s2237_s28  ;;  %p61_p2 = scmp.eq.s32.totalorder %s2253_s10, 0 }
   0xf   : > { %s2949_s11 = smov (%p42_p0, %s40_s11), 0  ;;  %p1907_p5 = scmp.lt.s32.totalorder %s2253_s10, 2 }
  0x10   : > { %2913 = sst [smem:[#allocation23_spill]] %s2949_s11  ;;  %p62_p4 = por %p61_p2, %p2893_p1 }
  0x11   : > { %s48_s13 = ssub.s32 %s2249_s9, %s2949_s11  ;;  %s328_s14 = sand.u32 1, %s2253_s10  }
  0x12   : > { %p51_p6 = scmp.eq.s32.totalorder %s48_s13, 0  ;;  %s330_s15 = sand.u32 1, %s2241_s29  }
  0x13   : > { %s1735_s16 = sshll.u32 %s2249_s9, 6  ;;  %s1734_s18 = sshll.u32 %s330_s15, 2 }
  0x14   : > { %s2368_s17 = scalar_select %p51_p6, %s2241_s29, %s53_s12  }
  0x15   : > { %s2915_s0 = sld [smem:[#allocation26_spill]]  ;;  %p2375_p7 = pnand %p1907_p5, %p62_p4 }
  0x16   : > { %2914 = sst [smem:[#allocation24_spill]] %s2368_s17  ;;  %s332_s23 = scalar_lea.vmem [#allocation6], %s1734_s18 }
  0x17   : > { %s340_s24 = sshll.u32 %s332_s23, 4  ;;  %s2379_s25 = sshll.u32 %s330_s15, 4  ;;  %s2381_s24 = int_to_ptr.vmem [resolvable:$true] %s340_s24 }
  0x18   : > { %s2383_s26 = scalar_lea.sflag [#allocation7], %s328_s14  ;;  %p2389_p9 = pneg %p2375_p7 }
  0x1b   : > { %s2373_s21 = scalar_lea.hbm %s2915_s0, %s1735_s16  ;;  %s2018_s15 = scalar_lea.hbm %s2915_s0, 128 }
  0x1c   : > { %s2013_s12 = scalar_lea.hbm %s2373_s21, 64  ;;  %p2019_p12 = scmp.lt.u32.totalorder %s2373_s21, %s2915_s0 }
  0x1d   : > { %p2014_p8 = scmp.ne.s32.totalorder %s2373_s21, %s2013_s12  ;;  %p2020_p13 = scmp.lt.u32.totalorder %s2018_s15, %s2013_s12 }
  0x1e   : > { %p2022_p2 = scmp.lt.u32.totalorder %s2013_s12, %s2373_s21 }
  0x1f   : > { %p2016_p10 = pnand %p2389_p9, %p2014_p8  ;;  %p2021_p0 = por %p2020_p13, %p2019_p12 }
  0x21   : > { %p2017_p11 = pneg %p2016_p10  ;;  %p2023_p4 = por %p2022_p2, %p2021_p0 }
  0x23   : > { %p2024_p5 = pnand %p2023_p4, %p2017_p11 }
  0x25   : > { %2027 = shalt.err (!%p2024_p5)
}
  0x26   : > { %s2028_s14 = scalar_lea.vmem %s2381_s24, 64  ;;  %s2255_s23 = smov [#allocation6]  }
  0x27   : > { %p2029_p6 = scmp.ne.s32.totalorder %s2381_s24, %s2028_s14  ;;  %s2033_s16 = sshll.u32 %s2255_s23, 4  ;;  %s2034_s16 = int_to_ptr.vmem [resolvable:$false] %s2033_s16 }
  0x28   : > { %s2035_s18 = scalar_lea.vmem %s2034_s16, 128  ;;  %p2036_p3 = scmp.lt.s32.totalorder %s2381_s24, %s2034_s16 }
  0x29   : > { %p2031_p8 = pnand %p2029_p6, %p2389_p9  ;;  %p2037_p1 = scmp.lt.s32.totalorder %s2035_s18, %s2028_s14 }
  0x2b   : > { %p2032_p10 = pneg %p2031_p8  ;;  %p2038_p12 = por %p2037_p1, %p2036_p3 }
  0x2d   : > { %p2039_p13 = pnand %p2038_p12, %p2032_p10 }
  0x2f   : > { %2042 = shalt.err (!%p2039_p13)
}
  0x30   : > { %1894 = dma.hbm_to_vmem [thread:$0]  (!%p2375_p7), %s2373_s21, 64, %s2381_s24, %s2383_s26  }
  0x31   : > { %s2898_s12 = sshll.u32 %s2249_s9, 8  ;;  %s351_s15 = scalar_lea.vmem [#allocation11], %s2379_s25 }
  0x32   : > { %s359_s19 = sshll.u32 %s351_s15, 4  ;;  %s373_s20 = scalar_lea.vmem [#allocation12], %s2379_s25  ;;  %s2415_s19 = int_to_ptr.vmem [resolvable:$true] %s359_s19 }
  0x33   : > { %s381_s14 = sshll.u32 %s373_s20, 4  ;;  %s2421_s23 = sadd.s32 4294967295, %s2253_s10   ;;  %s2418_s14 = int_to_ptr.vmem [resolvable:$true] %s381_s14 }
  0x34   : > { %s1728_s16 = sadd.s32 4294967294, %s2253_s10   ;;  %p66_p1 = scmp.ne.s32.totalorder %s2237_s28, %s2233_s27 }
  0x35   : > { %p2901_p3 = scmp.eq.s32.totalorder %s2421_s23, 0  ;;  %p260_p11 = scmp.eq.s32.totalorder %s2421_s23, 1 }
  0x36   : > { %p266_p0 = scmp.eq.s32.totalorder %s1728_s16, 1  ;;  %p1729_p2 = scmp.ge.s32.totalorder %s2253_s10, 1 }
  0x37   : > { %p2431_p4 = por %p2901_p3, %p66_p1  ;;  %p2919_p5 = scmp.ne.s32.totalorder %s2241_s29, %s2237_s28 }
  0x38   : > { %p2442_p8 = por %p266_p0, %p66_p1  ;;  %p273_p10 = scmp.lt.s32.totalorder %s2253_s10, 3 }
  0x39   : > { %s2918_s21 = scalar_select %p2431_p4, 1, 0 }
  0x3a   : > { %p2438_p6 = por %p260_p11, %p2919_p5  ;;  %p2447_p12 = pnand %p1729_p2, %p273_p10 }
  0x3b   : > { %s2921_s25 = scalar_select %p2442_p8, 1, 0 }
  0x3c   : > { %s2920_s24 = scalar_select %p2438_p6, 1, 0 }
  0x3d   : > { %2922 = sst [smem:[#allocation25_spill]] %s2921_s25  ;;  %s2256_s15 = smov [#allocation9]  }
  0x3e   : > { %s2923_s18 = scalar_select %p2447_p12, 1, 0 }
  0x3f   : > { %s285_s20 = sshll.u32 %s2256_s15, 4  ;;  %p1884_p13 = pneg %p2447_p12  ;;  %s2451_s20 = int_to_ptr.vmem [resolvable:$true] %s285_s20 }
  0x40   : > { %s2924_s3 = sld [smem:[#allocation27_spill]]  ;;  %s2257_s15 = smov [#allocation13]  }
  0x41   : > { %p2464_p1 = pnand %p1884_p13, %p2901_p3  ;;  %s2468_s29 = sshll.u32 %s2257_s15, 4  ;;  %s2496_s29 = int_to_ptr.vmem [resolvable:$true] %s2468_s29 }
  0x43   : > { %s2925_s17 = scalar_select %p2464_p1, 1, 0 }
  0x46   : > { %s2460_s11 = scalar_lea.hbm %s2924_s3, %s2898_s12  ;;  %s2048_s12 = scalar_lea.hbm %s2924_s3, 512 }
  0x47   : > { %s2043_s10 = scalar_lea.hbm %s2460_s11, 256  ;;  %p2049_p5 = scmp.lt.u32.totalorder %s2460_s11, %s2924_s3 }
  0x48   : > { %p2044_p11 = scmp.ne.s32.totalorder %s2460_s11, %s2043_s10  ;;  %p2050_p10 = scmp.lt.u32.totalorder %s2048_s12, %s2043_s10 }
  0x49   : > { %p2052_p3 = scmp.lt.u32.totalorder %s2043_s10, %s2460_s11 }
  0x4a   : > { %p2046_p0 = pnand %p2044_p11, %p2389_p9  ;;  %p2051_p13 = por %p2050_p10, %p2049_p5 }
  0x4c   : > { %p2047_p2 = pneg %p2046_p0  ;;  %p2053_p8 = por %p2052_p3, %p2051_p13 }
  0x4e   : > { %p2054_p6 = pnand %p2053_p8, %p2047_p2 }
  0x50   : > { %2057 = shalt.err (!%p2054_p6)
}
  0x51   : > { %s2058_s15 = scalar_lea.vmem %s2415_s19, 256  ;;  %s2258_s0 = smov [#allocation11]  }
  0x52   : > { %p2059_p11 = scmp.ne.s32.totalorder %s2415_s19, %s2058_s15  ;;  %s2063_s16 = sshll.u32 %s2258_s0, 4  ;;  %s2064_s16 = int_to_ptr.vmem [resolvable:$false] %s2063_s16 }
  0x53   : > { %s2065_s27 = scalar_lea.vmem %s2064_s16, 512  ;;  %p2066_p12 = scmp.lt.s32.totalorder %s2415_s19, %s2064_s16 }
  0x54   : > { %p2061_p0 = pnand %p2059_p11, %p2389_p9  ;;  %p2067_p1 = scmp.lt.s32.totalorder %s2065_s27, %s2058_s15 }
  0x56   : > { %p2062_p4 = pneg %p2061_p0  ;;  %p2068_p5 = por %p2067_p1, %p2066_p12 }
  0x58   : > { %p2069_p10 = pnand %p2068_p5, %p2062_p4 }
  0x5a   : > { %2072 = shalt.err (!%p2069_p10)
}
  0x5b   : > { %s2259_s10 = smov 64   ;;  %s2260_s12 = smov 4  }
  0x5c   : > { %1897 = dma.hbm_to_vmem [thread:$0]  (!%p2375_p7), %s2460_s11, 256, %s2415_s19, %s2383_s26, %s2259_s10, %s2259_s10, %s2260_s12  }
  0x5d   : > { %s2073_s0 = scalar_lea.hbm %s2885_s1, 256  ;;  %p2926_p4 = scmp.ne.s32.totalorder %s2925_s17, 0 }
  0x5e   : > { %p2074_p3 = scmp.ne.s32.totalorder %s2885_s1, %s2073_s0  ;;  %p2080_p1 = scmp.lt.u32.totalorder %s2073_s0, %s2885_s1 }
  0x5f   : > { %p2075_p6 = pneg %p2926_p4 }
  0x61   : > { %p2076_p8 = pnand %p2075_p6, %p2074_p3 }
  0x63   : > { %p2077_p12 = pneg %p2076_p8 }
  0x65   : > { %p2082_p2 = pnand %p2080_p1, %p2077_p12 }
  0x67   : > { %2085 = shalt.err (!%p2082_p2)
}
  0x68   : > { %s2086_s11 = scalar_lea.vmem %s2451_s20, 256  ;;  %p2094_p5 = scmp.lt.s32.totalorder %s2451_s20, %s2451_s20 }
  0x69   : > { %p2087_p13 = scmp.ne.s32.totalorder %s2451_s20, %s2086_s11  ;;  %p2095_p10 = scmp.lt.s32.totalorder %s2086_s11, %s2086_s11 }
  0x6b   : > { %p2089_p11 = pnand %p2087_p13, %p2075_p6  ;;  %p2096_p3 = por %p2095_p10, %p2094_p5 }
  0x6d   : > { %p2090_p0 = pneg %p2089_p11 }
  0x6f   : > { %p2097_p8 = pnand %p2096_p3, %p2090_p0 }
  0x71   : > { %2100 = shalt.err (!%p2097_p8)
}
  0x72   : > { %1887 = dma.hbm_to_vmem [thread:$0]  (!%p2926_p4), %s2885_s1, 256, %s2451_s20, [#allocation10], %s2259_s10, %s2259_s10, %s2260_s12  }
  0x73   : > { %s2101_s15 = scalar_lea.hbm %s2890_s6, 256 }
  0x74   : > { %p2102_p12 = scmp.ne.s32.totalorder %s2890_s6, %s2101_s15  ;;  %p2108_p13 = scmp.lt.u32.totalorder %s2101_s15, %s2890_s6 }
  0x76   : > { %p2104_p1 = pnand %p2102_p12, %p2075_p6 }
  0x78   : > { %p2105_p2 = pneg %p2104_p1 }
  0x7a   : > { %p2110_p11 = pnand %p2108_p13, %p2105_p2 }
  0x7c   : > { %2113 = shalt.err (!%p2110_p11)
}
  0x7d   : > { %s2114_s20 = scalar_lea.vmem %s2496_s29, 256  ;;  %p2122_p3 = scmp.lt.s32.totalorder %s2496_s29, %s2496_s29 }
  0x7e   : > { %p2115_p0 = scmp.ne.s32.totalorder %s2496_s29, %s2114_s20  ;;  %p2123_p8 = scmp.lt.s32.totalorder %s2114_s20, %s2114_s20 }
  0x80   : > { %p2117_p5 = pnand %p2115_p0, %p2075_p6  ;;  %p2124_p12 = por %p2123_p8, %p2122_p3 }
  0x82   : > { %p2118_p10 = pneg %p2117_p5 }
  0x84   : > { %p2125_p1 = pnand %p2124_p12, %p2118_p10 }
  0x86   : > { %2128 = shalt.err (!%p2125_p1)
}
  0x87   : > { %1890 = dma.hbm_to_vmem [thread:$0]  (!%p2926_p4), %s2890_s6, 256, %s2496_s29, [#allocation10], %s2259_s10, %s2259_s10, %s2260_s12  }
  0x88   : > { %s2927_s19 = sshll.u32 %s2249_s9, 8  ;;  %s2134_s11 = scalar_lea.hbm %s2888_s4, 512 }
  0x89   : > { %s2561_s0 = scalar_lea.hbm %s2888_s4, %s2927_s19 }
  0x8a   : > { %s2129_s17 = scalar_lea.hbm %s2561_s0, 256  ;;  %p2135_p4 = scmp.lt.u32.totalorder %s2561_s0, %s2888_s4 }
  0x8b   : > { %p2130_p6 = scmp.ne.s32.totalorder %s2561_s0, %s2129_s17  ;;  %p2136_p11 = scmp.lt.u32.totalorder %s2134_s11, %s2129_s17 }
  0x8c   : > { %p2138_p5 = scmp.lt.u32.totalorder %s2129_s17, %s2561_s0 }
  0x8d   : > { %p2132_p2 = pnand %p2130_p6, %p2389_p9  ;;  %p2137_p0 = por %p2136_p11, %p2135_p4 }
  0x8f   : > { %p2133_p13 = pneg %p2132_p2  ;;  %p2139_p10 = por %p2138_p5, %p2137_p0 }
  0x91   : > { %p2140_p3 = pnand %p2139_p10, %p2133_p13 }
  0x93   : > { %2143 = shalt.err (!%p2140_p3)
}
  0x94   : > { %s2144_s3 = scalar_lea.vmem %s2418_s14, 256  ;;  %s2261_s8 = smov [#allocation12]  }
  0x95   : > { %p2145_p8 = scmp.ne.s32.totalorder %s2418_s14, %s2144_s3  ;;  %s2149_s19 = sshll.u32 %s2261_s8, 4  ;;  %s2150_s19 = int_to_ptr.vmem [resolvable:$false] %s2149_s19 }
  0x96   : > { %s2151_s25 = scalar_lea.vmem %s2150_s19, 512  ;;  %p2152_p6 = scmp.lt.s32.totalorder %s2418_s14, %s2150_s19 }
  0x97   : > { %p2147_p12 = pnand %p2145_p8, %p2389_p9  ;;  %p2153_p2 = scmp.lt.s32.totalorder %s2151_s25, %s2144_s3 }
  0x99   : > { %p2148_p1 = pneg %p2147_p12  ;;  %p2154_p4 = por %p2153_p2, %p2152_p6 }
  0x9b   : > { %p2155_p11 = pnand %p2154_p4, %p2148_p1 }
  0x9d   : > { %2158 = shalt.err (!%p2155_p11)
}
  0x9e   : > { %1900 = dma.hbm_to_vmem [thread:$0]  (!%p2375_p7), %s2561_s0, 256, %s2418_s14, %s2383_s26, %s2259_s10, %s2259_s10, %s2260_s12  }
  0x9f   : > { %p2928_p9 = scmp.ne.s32.totalorder %s2923_s18, 0 }
  0xa0   : > { %s395_s13 = sand.u32 (!%p2928_p9), 1, %s2421_s23   ;;  %s2592_s15 = sand.u32 (!%p2928_p9), 1, %s2237_s28  }
  0xa1   : > { %393 = sbr.rel (%p2928_p9) target bundleno = 1725 (0x6bd), region = 52  ;;  %s1743_s17 = sshll.u32 (!%p2928_p9), %s2592_s15, 2 }
  0xa2   : > { %s396_s16 = scalar_lea.sflag (!%p2928_p9), [#allocation7], %s395_s13  ;;  %s399_s22 = scalar_lea.vmem (!%p2928_p9), [#allocation6], %s1743_s17 }
  0xa3   : > { %p2929_p13 = scmp.ne.s32.totalorder (!%p2928_p9), %s2918_s21, 0 }
  0xa8   : > { %2212 = dma.done.wait (%p2929_p13), %s396_s16, 64  }
  0xa9   : > { %2214 = vsyncadd (%p2929_p13), %s396_s16, 4294967232  ;;  %p2930_p7 = scmp.eq.s32.totalorder %s2421_s23, 0 }
  0xab   : > { %2216 = dma.done.wait (%p2930_p7), [#allocation10], 256   ;;  %p2931_p0 = pmov %p2930_p7 }
  0xac   : > { %s1745_s26 = sshll.u32 %s2592_s15, 4 }
  0xad   : > { %2218 = vsyncadd (%p2931_p0), [#allocation10], 4294967040  ;;  %s2604_s14 = scalar_lea.vmem [#allocation11], %s1745_s26 }
  0xae   : > { %2220 = dma.done.wait (%p2929_p13), %s396_s16, 512  }
  0xaf   : > { %2222 = vsyncadd (%p2929_p13), %s396_s16, 4294966784  ;;  %s2610_s18 = scalar_lea.vmem [#allocation12], %s1745_s26  ;;  %p2932_p5 = pmov %p2931_p0 }
  0xb0   : > { %p2933_p10 = pmov %p2931_p0 }
  0xb1   : > { %2224 = dma.done.wait (%p2932_p5), [#allocation10], 256  }
  0xb2   : > { %2226 = vsyncadd (%p2933_p10), [#allocation10], 4294967040  ;;  %v2262_v0 = vmov 0.0   ;;  %vm2263_vm0 = vmmov 0   ;;  %v1977_v1 = vld [vmem:[#allocation9] sm:$0xff]   ;;  %v1978_v2 = vld [vmem:[#allocation9 + $0x8] sm:$0xff]   ;;  %v570_v17 = vlaneseq }
  0xb3   : > { %1804 = vmatprep.subr.bf16.mxu0 %v2262_v0  ;;  %1808 = vmatprep.mubr.msk.bf16.mxu0 %vm2263_vm0, %v2262_v0  ;;  %v487_v3 = vld [vmem:[%s399_s22] sm:$0xf]  ;;  %vm511_vm1 = vcmask 261120   ;;  %s2264_s10 = smov 104   ;;  %s2265_s12 = smov 120   ;;  %vm659_vm2 = vcmask 64512  }
  0xb4   : > { %1812 = vmatprep.subr.bf16.mxu1 %v2262_v0  ;;  %1814 = vmatprep.mubr.msk.bf16.mxu1 %vm2263_vm0, %v2262_v0  ;;  %v1749_v4 = vld [vmem:[%s2886_s2] ss:$0 sm:$0xff]  ;;  %v672_v10 = vld [vmem:[%s2604_s14] sm:$0xf]  ;;  %v673_v11 = vld [vmem:[%s2604_s14 + $0x4] sm:$0xf] }
  0xb5   : > { %1805 = vmatpush3.bf16.msra.mxu0 %v1977_v1  ;;  %s2266_s0 = smov 112   ;;  %v757_v12 = vsel %vm659_vm2, %v672_v10, 0  ;;  %660 = vst.msk [vmem:[#allocation5] sm:$0xff] %vm659_vm2, %v2262_v0  ;;  %661 = vst.msk [vmem:[#allocation5 + $0x8] sm:$0xff] %vm659_vm2, %v2262_v0  ;;  %v811_v13 = vsel %vm659_vm2, %v673_v11, 0  ;;  %v2267_v14 = vmov 0  }
  0xb6   : > { %1806 = vmatprep.subr.bf16.mxu0 %v2262_v0  ;;  %662 = vst.msk [vmem:[#allocation5 + $0x10] sm:$0xff] %vm659_vm2, %v2262_v0  ;;  %663 = vst.msk [vmem:[#allocation5 + $0x18] sm:$0xff] %vm659_vm2, %v2262_v0  ;;  %1813 = vmatpush3.bf16.xpose.msra.mxu1 %v757_v12  ;;  %v2268_v15 = vmov 1983009808   ;;  %v2269_v18 = vmov 1934713408  }
  0xb7   : > { %1824 = vmatprep.subr.bf16.mxu1 %v2262_v0  ;;  %1975 = vset.pattern.permute.xlu0 %v2267_v14  ;;  %v568_v16 = vunpack.c.l.s4 %v2268_v15  ;;  %v600_v19 = vunpack.c.l.s4 %v2269_v18  ;;  %v571_v21 = vshrl.u32 %v570_v17, 7  ;;  %vm641_vm3 = vcmask 58368   ;;  %v674_v1 = vld [vmem:[%s2604_s14 + $0x8] sm:$0xf]  ;;  %v675_v15 = vld [vmem:[%s2604_s14 + $0xc] sm:$0xf] }
  0xb8   : > { %1976 = vset.pattern.permute.xlu1 %v2267_v14  ;;  %v865_v10 = vsel %vm659_vm2, %v674_v1, 0  ;;  %vm650_vm4 = vcmask 7168   ;;  %vm1093_vm5 = vcmask 1043456   ;;  %s2271_s3 = smov 16   ;;  %s2272_s8 = smov 8   ;;  %vm1475_vm6 = vcmask 130048  }
  0xb9   : > { %1807 = vmatpush3.bf16.msra.mxu0 %v1978_v2  ;;  %v569_v20 = vunpack.c.0.s8 %v568_v16  ;;  %v601_v24 = vunpack.c.0.s8 %v600_v19  ;;  %655 = vst.msk [vmem:[#allocation4] sm:$0xff] %vm650_vm4, %v2262_v0  ;;  %656 = vst.msk [vmem:[#allocation4 + $0x8] sm:$0xff] %vm650_vm4, %v2262_v0  ;;  %s2273_s19 = smov 24   ;;  %vm1477_vm7 = vcmask 195584   ;;  %s1748_s25 = sshll.u32 %s2592_s15, 3 }
  0xba   : > { %1818 = vmatprep.subr.bf16.mxu0 %v2262_v0  ;;  %657 = vst.msk [vmem:[#allocation4 + $0x10] sm:$0xff] %vm650_vm4, %v2262_v0  ;;  %658 = vst.msk [vmem:[#allocation4 + $0x18] sm:$0xff] %vm650_vm4, %v2262_v0  ;;  %s1768_s16 = sshll.u32 %s2245_s30, 7  ;;  %s474_s22 = scalar_lea.vmem [#allocation14], %s1748_s25 }
  0xbb   : > { %v2646_v25 = vsub.s32 %v569_v20, %v571_v21  ;;  %v2648_v31 = vsub.s32 %v601_v24, %v571_v21  ;;  %s1563_s26 = sshll.u32 %s474_s22, 4  ;;  %s2934_s23 = sld [smem:[#allocation28_spill]]  ;;  %s2836_s26 = int_to_ptr.vmem [resolvable:$true] %s1563_s26 }
  0xbc   : > { %1809 = vmatmul.mubr.msk.bf16.vlgmr.msra.gmra.mrb[0].mxu0 %vm511_vm1, %v487_v3  ;;  %s1549_s30 = scalar_lea.sflag [#allocation8], %s2592_s15  ;;  %p2935_p8 = scmp.ne.s32.totalorder %s2920_s24, 0 }
  0xbd   : > { %1820 = vmatprep.mubr.msk.bf16.mxu0 %vm2263_vm0, %v2262_v0 }
  0xc1   : > { %s2834_s21 = scalar_lea.hbm %s2934_s23, %s1768_s16 }
  0xc2   : > { %1819 = vmatpush3.bf16.xpose.msra.mxu0 %v811_v13 }
  0xc3   : > { %1830 = vmatprep.subr.bf16.mxu0 %v2262_v0 }
 0x18f   : > { %v549_v5 = vpop.f32.mrb[0].mxu0 }
 0x190   : > { %v550_v6 = vadd.f32 %v1749_v4, %v549_v5  ;;  %v1810_v7 = vpop.f32.mrb[1].mxu0 }
 0x191   : > { %v552_v8 = vpop.f32.mrb[2].mxu0 }
 0x192   : > { %562 = vrot.lane.b32.xlu1 %v550_v6, %s2264_s10  ;;  %556 = vrot.lane.b32.xlu0 %v550_v6, %s2265_s12  ;;  %v1811_v9 = vpop.f32.mrb[3].mxu0  ;;  %s2159_s10 = scalar_lea.vmem %s2836_s26, 128  ;;  %s2274_s12 = smov [#allocation14]  }
 0x193   : > { %p2160_p3 = scmp.ne.s32.totalorder %s2836_s26, %s2159_s10 }
 0x195   : > { %p2161_p12 = pnand %p2160_p3, %p2935_p8 }
 0x196   : > { %559 = vrot.lane.b32.xlu0 %v550_v6, %s2266_s0  ;;  %s2163_s0 = sshll.u32 %s2274_s12, 4  ;;  %s2164_s0 = int_to_ptr.vmem [resolvable:$false] %s2163_s0 }
 0x197   : > { %p2162_p1 = pneg %p2161_p12  ;;  %s2165_s27 = scalar_lea.vmem %s2164_s0, 256 }
 0x198   : > { %p2166_p6 = scmp.lt.s32.totalorder %s2836_s26, %s2164_s0  ;;  %p2167_p2 = scmp.lt.s32.totalorder %s2165_s27, %s2159_s10 }
 0x19a   : > { %p2168_p4 = por %p2167_p2, %p2166_p6 }
 0x19c   : > { %p2169_p11 = pnand %p2168_p4, %p2162_p1 }
 0x204   : > { %v563_v22 = vpop.permute.xlu1 %562  ;;  %v557_v23 = vpop.permute.xlu0 %556 }
 0x205   : > { %v581_v26 = vcombine.low %v557_v23, %v563_v22  ;;  %v582_v27 = vcombine.high %v557_v23, %v563_v22  ;;  %v919_v22 = vsel %vm659_vm2, %v675_v15, 0 }
 0x207   : > { %v589_v32 = vrot.slane %v581_v26, %v2646_v25  ;;  %v596_v33 = vrot.slane %v582_v27, %v2646_v25 }
 0x208   : > { %v560_v28 = vpop.permute.xlu0 %559 }
 0x209   : > { %v565_v29 = vcombine.low %v550_v6, %v560_v28  ;;  %v566_v30 = vcombine.high %v550_v6, %v560_v28 }
 0x20b   : > { %v573_v34 = vrot.slane %v565_v29, %v2646_v25  ;;  %v580_v35 = vrot.slane %v566_v30, %v2646_v25  ;;  %v2270_v30 = vmov -inf  }
 0x20c   : > { %651 = vst.msk [vmem:[#allocation3] sm:$0xff] %vm650_vm4, %v2270_v30  ;;  %652 = vst.msk [vmem:[#allocation3 + $0x8] sm:$0xff] %vm650_vm4, %v2270_v30 }
 0x20d   : > { %v597_v36 = vcombine.low %v573_v34, %v589_v32  ;;  %v598_v37 = vcombine.high %v573_v34, %v589_v32  ;;  %v613_v38 = vcombine.low %v580_v35, %v596_v33  ;;  %v614_v39 = vcombine.high %v580_v35, %v596_v33  ;;  %653 = vst.msk [vmem:[#allocation3 + $0x10] sm:$0xff] %vm650_vm4, %v2270_v30  ;;  %v1774_v32 = vld [vmem:[%s2889_s5] sm:$0xff]  }
 0x20e   : > { %654 = vst.msk [vmem:[#allocation3 + $0x18] sm:$0xff] %vm650_vm4, %v2270_v30  ;;  %v1775_v33 = vunpack.c.l.bf16 %v1774_v32  ;;  %v1776_v35 = vunpack.c.h.bf16 %v1774_v32  ;;  %v1088_v32 = vld [vmem:[%s2610_s18 + $0x8] sm:$0xf] }
 0x20f   : > { %v605_v40 = vrot.slane %v597_v36, %v2648_v31  ;;  %v612_v41 = vrot.slane %v598_v37, %v2648_v31  ;;  %v621_v42 = vrot.slane %v613_v38, %v2648_v31  ;;  %v628_v43 = vrot.slane %v614_v39, %v2648_v31  ;;  %v1781_v39 = vld [vmem:[%s2889_s5 + $0x8] sm:$0xff]  }
 0x211   : > { %v629_v44 = vcombine.high %v605_v40, %v2262_v0  ;;  %v630_v45 = vcombine.high %v612_v41, %v2262_v0  ;;  %v631_v46 = vcombine.high %v621_v42, %v2262_v0  ;;  %v632_v47 = vcombine.high %v628_v43, %v2262_v0 }
 0x212   : > { %v633_v48 = vpack.c.bf16 %v605_v40, %v605_v40  ;;  %v635_v49 = vpack.c.bf16 %v612_v41, %v612_v41  ;;  %v637_v50 = vpack.c.bf16 %v621_v42, %v621_v42  ;;  %v639_v51 = vpack.c.bf16 %v628_v43, %v628_v43 }
 0x213   : > { %v634_v52 = vpack.c.bf16 %v629_v44, %v629_v44  ;;  %v636_v53 = vpack.c.bf16 %v630_v45, %v630_v45  ;;  %v638_v54 = vpack.c.bf16 %v631_v46, %v631_v46  ;;  %v640_v55 = vpack.c.bf16 %v632_v47, %v632_v47 }
 0x214   : > { %642 = vst.msk [vmem:[#allocation2] sm:$0x3] %vm641_vm3, %v633_v48  ;;  %644 = vst.msk [vmem:[#allocation2 + $0x4] sm:$0x3] %vm641_vm3, %v635_v49  ;;  %v1779_v46 = vunpack.c.l.bf16 %v1781_v39 }
 0x215   : > { %646 = vst.msk [vmem:[#allocation2 + $0x8] sm:$0x3] %vm641_vm3, %v637_v50  ;;  %648 = vst.msk [vmem:[#allocation2 + $0xc] sm:$0x3] %vm641_vm3, %v639_v51  ;;  %v1780_v50 = vunpack.c.h.bf16 %v1781_v39 }
 0x216   : > { %643 = vst.msk [vmem:[#allocation2 + $0x2] sm:$0x3] %vm641_vm3, %v634_v52  ;;  %645 = vst.msk [vmem:[#allocation2 + $0x6] sm:$0x3] %vm641_vm3, %v636_v53 }
 0x217   : > { %647 = vst.msk [vmem:[#allocation2 + $0xa] sm:$0x3] %vm641_vm3, %v638_v54  ;;  %649 = vst.msk [vmem:[#allocation2 + $0xe] sm:$0x3] %vm641_vm3, %v640_v55 }
 0x21b   : > { %v2009_v56 = vld.sshfl [vmem:[#allocation2] sm:$0x33 pattern:$0x73516240] }
 0x21c   : > { %v2011_v58 = vld.sshfl [vmem:[#allocation2 + $0x8] sm:$0x33 pattern:$0x73516240]  ;;  %v723_v60 = vshrl.u32 %v2009_v56, 16  ;;  %v692_v61 = vcombine.high %v2009_v56, %v2267_v14 }
 0x21d   : > { %v2010_v57 = vld.sshfl [vmem:[#allocation2 + $0x2] sm:$0x33 pattern:$0x73516240]  ;;  %v735_v3 = vshrl.u32 %v2011_v58, 16  ;;  %v710_v6 = vcombine.high %v2011_v58, %v2267_v14 }
 0x21e   : > { %v2012_v59 = vld.sshfl [vmem:[#allocation2 + $0xa] sm:$0x33 pattern:$0x73516240]  ;;  %v722_v62 = vpack.i.b16 %v2010_v57, %v2009_v56  ;;  %v724_v2 = vshrl.u32 %v2010_v57, 16  ;;  %v701_v5 = vcombine.high %v2010_v57, %v2267_v14  ;;  %v729_v20 = vshrl.u32 %v692_v61, 16 }
 0x21f   : > { %v734_v63 = vpack.i.b16 %v2012_v59, %v2011_v58  ;;  %v736_v4 = vshrl.u32 %v2012_v59, 16  ;;  %v719_v7 = vcombine.high %v2012_v59, %v2267_v14  ;;  %v741_v21 = vshrl.u32 %v710_v6, 16 }
 0x220   : > { %v725_v9 = vpack.i.b16 %v724_v2, %v723_v60  ;;  %v730_v12 = vshrl.u32 %v701_v5, 16  ;;  %v728_v16 = vpack.i.b16 %v701_v5, %v692_v61  ;;  %v2726_v2 = vld [vmem:[#allocation3 + $0x8] sm:$0xff] }
 0x221   : > { %v744_v8 = vcombine.low %v722_v62, %v734_v63  ;;  %v737_v11 = vpack.i.b16 %v736_v4, %v735_v3  ;;  %v740_v17 = vpack.i.b16 %v719_v7, %v710_v6  ;;  %v742_v18 = vshrl.u32 %v719_v7, 16  ;;  %v2721_v62 = vld [vmem:[#allocation3] sm:$0xff]  ;;  %v2741_v7 = vld [vmem:[#allocation3 + $0x10] sm:$0xff] }
 0x222   : > { %v731_v23 = vpack.i.b16 %v730_v12, %v729_v20 }
 0x223   : > { %v751_v13 = vrot.slane %v744_v8, %v2646_v25  ;;  %v799_v19 = vcombine.low %v725_v9, %v737_v11  ;;  %v743_v24 = vpack.i.b16 %v742_v18, %v741_v21  ;;  %v853_v26 = vcombine.low %v728_v16, %v740_v17  ;;  %v1086_v16 = vld [vmem:[%s2610_s18] sm:$0xf]  ;;  %v1087_v17 = vld [vmem:[%s2610_s18 + $0x4] sm:$0xf] }
 0x224   : > { %v1095_v18 = vsel %vm1093_vm5, %v1086_v16, 0 }
 0x225   : > { %1815 = vmatmul.mubr.msk.bf16.vlgmr.msra.gmra.mrb[0].mxu1 %vm659_vm2, %v751_v13  ;;  %v806_v14 = vrot.slane %v799_v19, %v2646_v25  ;;  %v907_v27 = vcombine.low %v731_v23, %v743_v24  ;;  %v860_v28 = vrot.slane %v853_v26, %v2646_v25  ;;  %v1141_v19 = vsel %vm1093_vm5, %v1087_v17, 0 }
 0x226   : > { %1825 = vmatpush3.bf16.xpose.msra.mxu1 %v865_v10  ;;  %1826 = vmatprep.mubr.msk.bf16.mxu1 %vm2263_vm0, %v2262_v0  ;;  %v2746_v10 = vld [vmem:[#allocation3 + $0x18] sm:$0xff] }
 0x227   : > { %1836 = vmatprep.subr.bf16.mxu1 %v2262_v0  ;;  %1821 = vmatmul.mubr.msk.bf16.vlgmr.msra.gmra.mrb[4].mxu0 %vm659_vm2, %v806_v14  ;;  %v914_v29 = vrot.slane %v907_v27, %v2646_v25 }
 0x228   : > { %1831 = vmatpush3.bf16.xpose.msra.mxu0 %v919_v22  ;;  %1832 = vmatprep.mubr.msk.bf16.mxu0 %vm2263_vm0, %v2262_v0 }
 0x229   : > { %1842 = vmatprep.subr.bf16.mxu0 %v2262_v0 }
 0x22d   : > { %1827 = vmatmul.mubr.msk.bf16.vlgmr.msra.gmra.mrb[4].mxu1 %vm659_vm2, %v860_v28 }
 0x22e   : > { %1838 = vmatprep.mubr.msk.bf16.mxu1 %vm2263_vm0, %v2262_v0  ;;  %1837 = vmatpush3.bf16.msra.mxu1 %v1095_v18 }
 0x22f   : > { %1833 = vmatmul.mubr.msk.bf16.vlgmr.msra.gmra.mrb[8].mxu0 %vm659_vm2, %v914_v29  ;;  %1848 = vmatprep.subr.bf16.mxu1 %v2262_v0 }
 0x230   : > { %1844 = vmatprep.mubr.msk.bf16.mxu0 %vm2263_vm0, %v2262_v0  ;;  %1843 = vmatpush3.bf16.msra.mxu0 %v1141_v19  ;;  %v1983_v19 = vld [vmem:[#allocation13] sm:$0xff]  }
 0x231   : > { %1854 = vmatprep.subr.bf16.mxu0 %v2262_v0 }
 0x2f8   : > { %v793_v34 = vpop.f32.mrb[0].mxu1 }
 0x2f9   : > { %v2711_v36 = vadd.f32 %v1775_v33, %v793_v34  ;;  %v1816_v37 = vpop.f32.mrb[1].mxu1 }
 0x2fa   : > { %v796_v38 = vpop.f32.mrb[2].mxu1  ;;  %v847_v40 = vpop.f32.mrb[4].mxu0 }
 0x2fb   : > { %v1817_v41 = vpop.f32.mrb[3].mxu1  ;;  %v965_v42 = vsel %vm659_vm2, %v2711_v36, -inf  ;;  %v848_v43 = vadd.f32 %v1776_v35, %v847_v40  ;;  %v1822_v44 = vpop.f32.mrb[5].mxu0  ;;  %v1089_v38 = vld [vmem:[%s2610_s18 + $0xc] sm:$0xf] }
 0x2fc   : > { %966 = vmax.xlane.f32.xlu1 %v965_v42  ;;  %v850_v45 = vpop.f32.mrb[6].mxu0  ;;  %v1233_v42 = vsel %vm1093_vm5, %v1089_v38, 0 }
 0x2fd   : > { %v1823_v47 = vpop.f32.mrb[7].mxu0  ;;  %v968_v48 = vsel %vm659_vm2, %v848_v43, -inf }
 0x2fe   : > { %969 = vmax.xlane.f32.xlu0 %v968_v48 }
 0x300   : > { %v901_v49 = vpop.f32.mrb[4].mxu1 }
 0x301   : > { %v902_v51 = vadd.f32 %v1779_v46, %v901_v49  ;;  %v1828_v52 = vpop.f32.mrb[5].mxu1 }
 0x302   : > { %v904_v53 = vpop.f32.mrb[6].mxu1  ;;  %v955_v54 = vpop.f32.mrb[8].mxu0 }
 0x303   : > { %v1829_v55 = vpop.f32.mrb[7].mxu1  ;;  %v971_v56 = vsel %vm659_vm2, %v902_v51, -inf  ;;  %v956_v57 = vadd.f32 %v1780_v50, %v955_v54  ;;  %v1834_v58 = vpop.f32.mrb[9].mxu0 }
 0x304   : > { %972 = vmax.xlane.f32.xlu0 %v971_v56  ;;  %v958_v59 = vpop.f32.mrb[10].mxu0 }
 0x305   : > { %v1835_v60 = vpop.f32.mrb[11].mxu0  ;;  %v974_v61 = vsel %vm659_vm2, %v956_v57, -inf  ;;  %v1026_v59 = vld [vmem:[#allocation4 + $0x8] sm:$0xff] }
 0x306   : > { %975 = vmax.xlane.f32.xlu1 %v974_v61 }
 0x389   : > { %v967_v63 = vpop.xlane.xlu1 %966 }
 0x38a   : > { %v2724_v1 = vmax.f32 %v2721_v62, %v967_v63 }
 0x38b   : > { %v970_v4 = vpop.xlane.xlu0 %969 }
 0x38c   : > { %v981_v3 = vsub.f32 %v2721_v62, %v2724_v1  ;;  %1283 = vst.msk [vmem:[#allocation3] sm:$0xff] %vm650_vm4, %v2724_v1  ;;  %995 = vperm.xlu0 %1975, %v2724_v1   ;;  %v2734_v5 = vmax.f32 %v2726_v2, %v970_v4 }
 0x38e   : > { %v982_v6 = vsub.f32 %v2726_v2, %v2734_v5  ;;  %1284 = vst.msk [vmem:[#allocation3 + $0x8] sm:$0xff] %vm650_vm4, %v2734_v5  ;;  %1000 = vperm.xlu1 %1976, %v2734_v5   ;;  %v985_v50 = vmul.f32 1.442695, %v981_v3  ;;  %v1027_v2 = vld [vmem:[#allocation4 + $0x10] sm:$0xff]  ;;  %v1028_v5 = vld [vmem:[#allocation4 + $0x18] sm:$0xff] }
 0x390   : > { %v987_v47 = vmul.f32 1.442695, %v982_v6 }
 0x391   : > { %v973_v8 = vpop.xlane.xlu0 %972 }
 0x392   : > { %v2744_v9 = vmax.f32 %v2741_v7, %v973_v8 }
 0x393   : > { %v976_v12 = vpop.xlane.xlu1 %975 }
 0x394   : > { %v983_v11 = vsub.f32 %v2741_v7, %v2744_v9  ;;  %1285 = vst.msk [vmem:[#allocation3 + $0x10] sm:$0xff] %vm650_vm4, %v2744_v9  ;;  %1005 = vperm.xlu1 %1976, %v2744_v9   ;;  %v2754_v13 = vmax.f32 %v2746_v10, %v976_v12 }
 0x396   : > { %v984_v15 = vsub.f32 %v2746_v10, %v2754_v13  ;;  %1286 = vst.msk [vmem:[#allocation3 + $0x18] sm:$0xff] %vm650_vm4, %v2754_v13 }
 0x398   : > { %1010 = vperm.xlu1 %1976, %v2754_v13   ;;  %v991_v52 = vmul.f32 1.442695, %v984_v15 }
 0x40b   : > { %v996_v20 = vpop.permute.xlu0 %995 }
 0x40c   : > { %v1013_v21 = vsub.f32 %v2711_v36, %v996_v20  ;;  %v1187_v36 = vsel %vm1093_vm5, %v1088_v32, 0  ;;  %v1054_v20 = vld [vmem:[#allocation5] sm:$0xff] }
 0x40d   : > { %v1001_v22 = vpop.permute.xlu1 %1000 }
 0x40e   : > { %v1017_v14 = vmul.f32 1.442695, %v1013_v21  ;;  %v1014_v23 = vsub.f32 %v848_v43, %v1001_v22 }
 0x410   : > { %1985 = vpow2.f32 %v1017_v14  ;;  %v1019_v24 = vmul.f32 1.442695, %v1014_v23  ;;  %v1055_v14 = vld [vmem:[#allocation5 + $0x8] sm:$0xff] }
 0x412   : > { %1987 = vpow2.f32 %v1019_v24 }
 0x413   : > { %v1006_v26 = vpop.permute.xlu1 %1005 }
 0x414   : > { %v1015_v27 = vsub.f32 %v902_v51, %v1006_v26  ;;  %v989_v51 = vmul.f32 1.442695, %v983_v11 }
 0x416   : > { %v1021_v28 = vmul.f32 1.442695, %v1015_v27 }
 0x417   : > { %v1011_v29 = vpop.permute.xlu1 %1010 }
 0x418   : > { %1989 = vpow2.f32 %v1021_v28  ;;  %v1016_v30 = vsub.f32 %v956_v57, %v1011_v29  ;;  %v1025_v57 = vld [vmem:[#allocation4] sm:$0xff] }
 0x41a   : > { %v1986_v33 = vpop.eup %1985  ;;  %v1023_v34 = vmul.f32 1.442695, %v1016_v30 }
 0x41b   : > { %v1033_v35 = vsel %vm659_vm2, %v1986_v33, 0.0  ;;  %v1082_v37 = vpack.c.bf16 %v1986_v33, %v1986_v33 }
 0x41c   : > { %1991 = vpow2.f32 %v1023_v34  ;;  %1034 = vadd.xlane.f32.xlu1 %v1033_v35  ;;  %v1988_v39 = vpop.eup %1987  ;;  %v1056_v34 = vld [vmem:[#allocation5 + $0x10] sm:$0xff] }
 0x41d   : > { %1839 = vmatmul.mubr.msk.bf16.vlgmr.msra.gmra.mrb[8].mxu1 %vm659_vm2, %v1082_v37  ;;  %v1036_v40 = vsel %vm659_vm2, %v1988_v39, 0.0  ;;  %v1083_v41 = vpack.c.bf16 %v1988_v39, %v1988_v39  ;;  %1993 = vpow2.f32 %v987_v47  ;;  %v1057_v39 = vld [vmem:[#allocation5 + $0x18] sm:$0xff] }
 0x41e   : > { %1849 = vmatpush3.bf16.msra.mxu1 %v1187_v36  ;;  %1850 = vmatprep.mubr.msk.bf16.mxu1 %vm2263_vm0, %v2262_v0  ;;  %1995 = vpow2.f32 %v985_v50 }
 0x41f   : > { %1037 = vadd.xlane.f32.xlu0 %v1036_v40  ;;  %1860 = vmatprep.subr.bf16.mxu1 %v2262_v0  ;;  %1997 = vpow2.f32 %v989_v51 }
 0x420   : > { %1845 = vmatmul.mubr.msk.bf16.vlgmr.msra.gmra.mrb[12].mxu0 %vm659_vm2, %v1083_v41  ;;  %1999 = vpow2.f32 %v991_v52 }
 0x421   : > { %1855 = vmatpush3.bf16.msra.mxu0 %v1233_v42  ;;  %1856 = vmatprep.mubr.msk.bf16.mxu0 %vm2263_vm0, %v2262_v0 }
 0x422   : > { %v1990_v43 = vpop.eup %1989 }
 0x423   : > { %v1039_v44 = vsel %vm659_vm2, %v1990_v43, 0.0  ;;  %v1084_v45 = vpack.c.bf16 %v1990_v43, %v1990_v43 }
 0x424   : > { %1040 = vadd.xlane.f32.xlu1 %v1039_v44 }
 0x425   : > { %1851 = vmatmul.mubr.msk.bf16.vlgmr.msra.gmra.mrb[12].mxu1 %vm659_vm2, %v1084_v45 }
 0x426   : > { %v1992_v46 = vpop.eup %1991  ;;  %1864 = vmatprep.mubr.msk.bf16.mxu1 %vm2263_vm0, %v2262_v0  ;;  %1861 = vmatpush3.bf16.msra.mxu1 %v1983_v19 }
 0x427   : > { %v1042_v48 = vsel %vm659_vm2, %v1992_v46, 0.0  ;;  %v1085_v49 = vpack.c.bf16 %v1992_v46, %v1992_v46  ;;  %v1994_v53 = vpop.eup %1993  ;;  %1862 = vmatprep.subr.bf16.mxu1 %v2262_v0 }
 0x428   : > { %1043 = vadd.xlane.f32.xlu1 %v1042_v48  ;;  %v1996_v54 = vpop.eup %1995  ;;  %v1030_v62 = vmul.f32 %v1994_v53, %v1026_v59 }
 0x429   : > { %1857 = vmatmul.mubr.msk.bf16.vlgmr.msra.gmra.mrb[16].mxu0 %vm659_vm2, %v1085_v49  ;;  %v1998_v55 = vpop.eup %1997  ;;  %v1029_v58 = vmul.f32 %v1996_v54, %v1025_v57 }
 0x42a   : > { %v2000_v56 = vpop.eup %1999  ;;  %v1031_v3 = vmul.f32 %v1998_v55, %v1027_v2 }
 0x42b   : > { %v1032_v8 = vmul.f32 %v2000_v56, %v1028_v5 }
 0x435   : > { %1065 = vperm.xlu0 %1975, %v1994_v53  }
 0x439   : > { %1060 = vperm.xlu1 %1976, %v1996_v54  }
 0x43d   : > { %1070 = vperm.xlu1 %1976, %v1998_v55  }
 0x441   : > { %1075 = vperm.xlu1 %1976, %v2000_v56  }
 0x4a9   : > { %v1035_v60 = vpop.xlane.xlu1 %1034 }
 0x4aa   : > { %v1045_v61 = vadd.f32 %v1035_v60, %v1029_v58 }
 0x4ac   : > { %1050 = vst.msk [vmem:[#allocation4] sm:$0xff] %vm650_vm4, %v1045_v61  ;;  %v1038_v63 = vpop.xlane.xlu0 %1037 }
 0x4ad   : > { %v1046_v1 = vadd.f32 %v1038_v63, %v1030_v62 }
 0x4af   : > { %1051 = vst.msk [vmem:[#allocation4 + $0x8] sm:$0xff] %vm650_vm4, %v1046_v1 }
 0x4b1   : > { %v1041_v4 = vpop.xlane.xlu1 %1040 }
 0x4b2   : > { %v1047_v6 = vadd.f32 %v1041_v4, %v1031_v3 }
 0x4b3   : > { %v1290_v7 = vld [vmem:[#allocation4] sm:$0xff] }
 0x4b4   : > { %1052 = vst.msk [vmem:[#allocation4 + $0x10] sm:$0xff] %vm650_vm4, %v1047_v6  ;;  %2001 = vrcp.f32 %v1290_v7  ;;  %v1066_v22 = vpop.permute.xlu0 %1065 }
 0x4b5   : > { %v1044_v9 = vpop.xlane.xlu1 %1043  ;;  %v1079_v28 = vmul.f32 %v1066_v22, %v1055_v14 }
 0x4b6   : > { %v1048_v10 = vadd.f32 %v1044_v9, %v1032_v8  ;;  %v1291_v11 = vld [vmem:[#allocation4 + $0x8] sm:$0xff] }
 0x4b7   : > { %2003 = vrcp.f32 %v1291_v11 }
 0x4b8   : > { %1053 = vst.msk [vmem:[#allocation4 + $0x18] sm:$0xff] %vm650_vm4, %v1048_v10 }
 0x4b9   : > { %v1061_v21 = vpop.permute.xlu1 %1060 }
 0x4ba   : > { %v1078_v23 = vmul.f32 %v1061_v21, %v1054_v20 }
 0x4bb   : > { %v1292_v12 = vld [vmem:[#allocation4 + $0x10] sm:$0xff] }
 0x4bc   : > { %2005 = vrcp.f32 %v1292_v12 }
 0x4bd   : > { %v1071_v29 = vpop.permute.xlu1 %1070 }
 0x4be   : > { %v2002_v13 = vpop.eup %2001  ;;  %v1080_v38 = vmul.f32 %v1071_v29, %v1056_v34 }
 0x4bf   : > { %1304 = vperm.xlu1 %1976, %v2002_v13   ;;  %v1293_v15 = vld [vmem:[#allocation4 + $0x18] sm:$0xff]  ;;  %v1984_v13 = vld [vmem:[#allocation13 + $0x8] sm:$0xff]  }
 0x4c0   : > { %2007 = vrcp.f32 %v1293_v15  ;;  %1863 = vmatpush3.bf16.msra.mxu1 %v1984_v13 }
 0x4c1   : > { %v2004_v16 = vpop.eup %2003  ;;  %v1076_v40 = vpop.permute.xlu1 %1075 }
 0x4c2   : > { %1309 = vperm.xlu0 %1975, %v2004_v16   ;;  %v1081_v45 = vmul.f32 %v1076_v40, %v1057_v39 }
 0x4c6   : > { %v2006_v17 = vpop.eup %2005 }
 0x4c7   : > { %1314 = vperm.xlu1 %1976, %v2006_v17  }
 0x4ca   : > { %v2008_v18 = vpop.eup %2007 }
 0x4cb   : > { %1319 = vperm.xlu0 %1975, %v2008_v18  }
 0x4f0   : > { %v1131_v24 = vpop.f32.mrb[8].mxu1 }
 0x4f1   : > { %v1275_v26 = vadd.f32 %v1131_v24, %v1078_v23  ;;  %v1840_v27 = vpop.f32.mrb[9].mxu1 }
 0x4f2   : > { %v1134_v30 = vpop.f32.mrb[10].mxu1 }
 0x4f3   : > { %1279 = vst.msk [vmem:[#allocation5] sm:$0xff] %vm659_vm2, %v1275_v26  ;;  %v1177_v32 = vpop.f32.mrb[12].mxu0  ;;  %v1841_v33 = vpop.f32.mrb[11].mxu1 }
 0x4f4   : > { %v1276_v35 = vadd.f32 %v1177_v32, %v1079_v28  ;;  %v1846_v37 = vpop.f32.mrb[13].mxu0 }
 0x4f5   : > { %v1180_v36 = vpop.f32.mrb[14].mxu0 }
 0x4f6   : > { %1280 = vst.msk [vmem:[#allocation5 + $0x8] sm:$0xff] %vm659_vm2, %v1276_v35  ;;  %v1847_v0 = vpop.f32.mrb[15].mxu0 }
 0x4f8   : > { %v1223_v41 = vpop.f32.mrb[12].mxu1 }
 0x4f9   : > { %v1277_v42 = vadd.f32 %v1223_v41, %v1080_v38  ;;  %v1852_v43 = vpop.f32.mrb[13].mxu1 }
 0x4fa   : > { %v1226_v44 = vpop.f32.mrb[14].mxu1  ;;  %v1298_v57 = vld [vmem:[#allocation5] sm:$0xff] }
 0x4fb   : > { %1281 = vst.msk [vmem:[#allocation5 + $0x10] sm:$0xff] %vm659_vm2, %v1277_v42  ;;  %v1853_v46 = vpop.f32.mrb[15].mxu1  ;;  %v1763_v44 = vld [vmem:[%s2891_s7] ss:$0 sm:$0xff] }
 0x4fc   : > { %v1269_v47 = vpop.f32.mrb[16].mxu0 }
 0x4fd   : > { %v1278_v48 = vadd.f32 %v1269_v47, %v1081_v45  ;;  %v1858_v49 = vpop.f32.mrb[17].mxu0  ;;  %v1299_v59 = vld [vmem:[#allocation5 + $0x8] sm:$0xff] }
 0x4fe   : > { %v1272_v50 = vpop.f32.mrb[18].mxu0 }
 0x4ff   : > { %1282 = vst.msk [vmem:[#allocation5 + $0x18] sm:$0xff] %vm659_vm2, %v1278_v48  ;;  %v1859_v51 = vpop.f32.mrb[19].mxu0 }
 0x502   : > { %v1300_v54 = vld [vmem:[#allocation5 + $0x10] sm:$0xff] }
 0x506   : > { %v1301_v61 = vld [vmem:[#allocation5 + $0x18] sm:$0xff] }
 0x53e   : > { %v1305_v52 = vpop.permute.xlu1 %1304 }
 0x53f   : > { %v1322_v58 = vmul.f32 %v1305_v52, %v1298_v57 }
 0x541   : > { %v1310_v53 = vpop.permute.xlu0 %1309 }
 0x542   : > { %v1323_v62 = vmul.f32 %v1310_v53, %v1299_v59 }
 0x546   : > { %v1315_v55 = vpop.permute.xlu1 %1314 }
 0x547   : > { %v1324_v56 = vmul.f32 %v1315_v55, %v1300_v54 }
 0x549   : > { %v1326_v63 = vcombine.low %v1322_v58, %v1324_v56  ;;  %v1327_v1 = vcombine.high %v1322_v58, %v1324_v56 }
 0x54a   : > { %v1320_v60 = vpop.permute.xlu0 %1319 }
 0x54b   : > { %v1325_v2 = vmul.f32 %v1320_v60, %v1301_v61  ;;  %v1334_v5 = vrot.slane %v1326_v63, %v2646_v25  ;;  %v1341_v6 = vrot.slane %v1327_v1, %v2646_v25 }
 0x54d   : > { %v1342_v3 = vcombine.low %v1323_v62, %v1325_v2  ;;  %v1343_v4 = vcombine.high %v1323_v62, %v1325_v2 }
 0x54f   : > { %v1350_v7 = vrot.slane %v1342_v3, %v2646_v25  ;;  %v1357_v8 = vrot.slane %v1343_v4, %v2646_v25 }
 0x551   : > { %v1358_v9 = vcombine.low %v1334_v5, %v1350_v7  ;;  %v1359_v10 = vcombine.high %v1334_v5, %v1350_v7  ;;  %v1374_v11 = vcombine.low %v1341_v6, %v1357_v8  ;;  %v1375_v12 = vcombine.high %v1341_v6, %v1357_v8 }
 0x553   : > { %v1366_v15 = vrot.slane %v1358_v9, %v2648_v31  ;;  %v1373_v16 = vrot.slane %v1359_v10, %v2648_v31  ;;  %v1382_v17 = vrot.slane %v1374_v11, %v2648_v31  ;;  %v1389_v18 = vrot.slane %v1375_v12, %v2648_v31 }
 0x555   : > { %v1394_v19 = vcombine.low %v1366_v15, %v1373_v16  ;;  %v1761_v20 = vcombine.high %v1366_v15, %v1373_v16  ;;  %v1410_v21 = vcombine.low %v1382_v17, %v1389_v18  ;;  %v1762_v14 = vcombine.high %v1382_v17, %v1389_v18 }
 0x557   : > { %v1401_v22 = vrot.slane %v1394_v19, %v2646_v25  ;;  %v1409_v23 = vrot.slane %v1761_v20, %v2646_v25  ;;  %v1417_v24 = vrot.slane %v1410_v21, %v2646_v25  ;;  %v1425_v26 = vrot.slane %v1762_v14, %v2646_v25 }
 0x559   : > { %v1427_v27 = vcombine.high %v1401_v22, %v1409_v23  ;;  %v1443_v28 = vcombine.high %v1417_v24, %v1425_v26  ;;  %v1426_v29 = vcombine.low %v1401_v22, %v1409_v23  ;;  %v1442_v30 = vcombine.low %v1417_v24, %v1425_v26 }
 0x55b   : > { %v1441_v32 = vrot.slane %v1427_v27, %v2648_v31  ;;  %v1457_v33 = vrot.slane %v1443_v28, %v2648_v31  ;;  %v1434_v34 = vrot.slane %v1426_v29, %v2648_v31  ;;  %v1450_v35 = vrot.slane %v1442_v30, %v2648_v31 }
 0x55d   : > { %v1460_v37 = vcombine.low %v1441_v32, %v1457_v33  ;;  %v1459_v36 = vcombine.high %v1434_v34, %v1450_v35  ;;  %v1458_v0 = vcombine.low %v1434_v34, %v1450_v35  ;;  %v1461_v25 = vcombine.high %v1441_v32, %v1457_v33 }
 0x55f   : > { %1467 = vrot.lane.b32.xlu0 %v1460_v37, %s2271_s3  ;;  %1463 = vrot.lane.b32.xlu1 %v1459_v36, %s2272_s8 }
 0x563   : > { %1471 = vrot.lane.b32.xlu1 %v1461_v25, %s2273_s19 }
 0x5d1   : > { %v1464_v38 = vpop.permute.xlu1 %1463  ;;  %v1468_v39 = vpop.permute.xlu0 %1467 }
 0x5d2   : > { %v1474_v40 = vsel %vm659_vm2, %v1458_v0, %v1464_v38 }
 0x5d3   : > { %v1476_v31 = vsel %vm1475_vm6, %v1474_v40, %v1468_v39 }
 0x5d5   : > { %v1472_v41 = vpop.permute.xlu1 %1471 }
 0x5d6   : > { %v1478_v42 = vsel %vm1477_vm7, %v1476_v31, %v1472_v41 }
 0x5d7   : > { %v1479_v43 = vpack.c.bf16 %v1478_v42, %v1478_v42 }
 0x5d9   : > { %1865 = vmatmul.mubr.msk.bf16.vlgmr.msra.gmra.mrb[16].mxu1 %vm511_vm1, %v1479_v43 }
 0x6ac   : > { %v1541_v45 = vpop.f32.mrb[16].mxu1 }
 0x6ad   : > { %v1542_v46 = vadd.f32 %v1763_v44, %v1541_v45  ;;  %v1866_v47 = vpop.f32.mrb[17].mxu1 }
 0x6ae   : > { %v1544_v48 = vpop.f32.mrb[18].mxu1 }
 0x6af   : > { %v1867_v49 = vpop.f32.mrb[19].mxu1  ;;  %1547 = vst.msk [vmem:[%s474_s22] sm:$0xff] %vm511_vm1, %v1542_v46 }
 0x6b0   : > { %2172 = shalt.err (!%p2169_p11)
}
 0x6b1   : > { %s2173_s15 = scalar_lea.hbm %s2834_s21, 128  ;;  %s2177_s20 = scalar_lea.hbm %s2934_s23, 256 }
 0x6b2   : > { %p2174_p9 = scmp.ne.s32.totalorder %s2834_s21, %s2173_s15  ;;  %p2178_p0 = scmp.lt.u32.totalorder %s2834_s21, %s2934_s23 }
 0x6b3   : > { %p2179_p5 = scmp.lt.u32.totalorder %s2177_s20, %s2173_s15  ;;  %p2181_p3 = scmp.lt.u32.totalorder %s2173_s15, %s2834_s21 }
 0x6b4   : > { %p2175_p13 = pnand %p2174_p9, %p2935_p8 }
 0x6b5   : > { %p2180_p10 = por %p2179_p5, %p2178_p0 }
 0x6b6   : > { %p2176_p7 = pneg %p2175_p13 }
 0x6b7   : > { %p2182_p12 = por %p2181_p3, %p2180_p10 }
 0x6b9   : > { %p2183_p1 = pnand %p2182_p12, %p2176_p7 }
 0x6bb   : > { %2186 = shalt.err (!%p2183_p1)
}
 0x6bc   : > { %1882 = dma.vmem_to_hbm [thread:$0]  (%p2935_p8), %s2836_s26, 128, %s2834_s21, %s1549_s30  }
 0x6bd PF: > { %s2936_s19 = sld [smem:[#allocation20_spill]]  ;;  %s2937_s25 = sld [smem:[#allocation25_spill]] }
 0x6be   : > { %s2938_s13 = sld [smem:[#allocation22_spill]] }
 0x6c3   : > { %s1575_s17 = sand.u32 1, %s2936_s19   ;;  %p2939_p6 = scmp.ne.s32.totalorder %s2937_s25, 0 }
 0x6c4   : > { %p2940_p2 = scmp.ge.s32.totalorder %s2938_s13, 2  ;;  %s1576_s16 = scalar_lea.sflag [#allocation8], %s1575_s17 }
 0x6c6   : > { %p1902_p4 = pnand %p2940_p2, %p2939_p6 }
 0x6c8   : > { %2228 = dma.done.wait (!%p1902_p4), %s1576_s16, 128  }
 0x6c9   : > { %2230 = vsyncadd (!%p1902_p4), %s1576_s16, 4294967168  ;;  %s25_s10 = sadd.s32 1, %s2938_s13   ;;  %s2941_s22 = sld [smem:[#allocation21_spill]] }
 0x6ca   : > { %p22_p11 = scmp.ge.s32.totalorder %s25_s10, 4   ;;  %s2942_s29 = sld [smem:[#allocation24_spill]] }
 0x6cb   : > { %s2943_s24 = sld [smem:[#allocation23_spill]]  ;;  %s2944_s27 = smov %s2237_s28 }
 0x6cc   : > { %s2946_s30 = smov %s2249_s9  ;;  %24 = sbr.rel (!%p22_p11) target bundleno = 11 (0xb), region = 138 }
 0x6cf   : > { %s2945_s28 = smov %s2941_s22 }
 0x6d1   : > { %s2947_s9 = smov %s2943_s24 }
 0x6d3   :  { %1581 = vsyncpa [#allocation7], 1 }
 0x6d4   :  { %1583 = vsyncpa [#allocation7 + $0x1], 1 }
 0x6d5   :  { %1584 = vsyncpa [#allocation10], 1 }
 0x6d6   :  { %1585 = vsyncpa [#allocation8], 1 }
 0x6d7   :  { %1587 = vsyncpa [#allocation8 + $0x1], 1 }

</bundles_post_ra>
